<compile_context>
chip_gen: v7x
topology: tpu7x:2x2x1
jax: 0.10.0
libtpu: 0.0.40
codegen_flags: <defaults>
</compile_context>

<pallas_src>
import jax
import jax.numpy as jnp
from jax.experimental import pallas as pl
from jax.experimental.pallas import tpu as pltpu


def _round_up(x, m):
    return (x + m - 1) // m * m


# ---------------------------------------------------------------------------
# Kernel
# ---------------------------------------------------------------------------
def _fpn_predictor_kernel(x_ref, w_ref, b_ref, out_ref, acc_ref):
    k = pl.program_id(1)

    @pl.when(k == 0)
    def _():
        acc_ref[...] = jnp.zeros_like(acc_ref)

    # Cast x to bf16 in-kernel (avoids a separate HBM cast pass); the fused
    # weight is pre-cast to bf16 once; accumulation stays f32 on the MXU.
    x_bf = x_ref[...].astype(jnp.bfloat16)
    acc_ref[...] += jnp.dot(x_bf, w_ref[...],
                            preferred_element_type=jnp.float32)

    @pl.when(k == pl.num_programs(1) - 1)
    def _():
        out_ref[...] = (acc_ref[...] + b_ref[...]).astype(out_ref.dtype)


# ---------------------------------------------------------------------------
# One-time parameter preparation (hoisted out of the forward path)
# ---------------------------------------------------------------------------
def prepare_fpn_predictor_params(w_cls, b_cls, w_bbox, b_bbox):
    """Fuse the two Linear branches once.

    Weights must be in (in_features, out_features) layout, i.e. the transpose
    of PyTorch's nn.Linear storage; do that transpose once at checkpoint-load
    time, not per forward call.
    """
    c, num_classes = w_cls.shape
    num_bbox_out = w_bbox.shape[1]
    out_total = num_classes + num_bbox_out
    out_pad = _round_up(out_total, 128)   # lane-dense output (unmasked vst)
    c_pad = _round_up(c, 128)             # lane-dense x loads / full-K MXU

    w = jnp.concatenate([w_cls, w_bbox], axis=1)
    b = jnp.concatenate([jnp.reshape(b_cls, (1, -1)),
                         jnp.reshape(b_bbox, (1, -1))], axis=1)
    w = jnp.pad(w, ((0, c_pad - c), (0, out_pad - out_total)))
    b = jnp.pad(b, ((0, 0), (0, out_pad - out_total)))

    meta = dict(c=c, c_pad=c_pad, num_classes=num_classes,
                out_total=out_total, out_pad=out_pad)
    return w.astype(jnp.bfloat16), b.astype(jnp.float32), meta


# ---------------------------------------------------------------------------
# VMEM-aware tile selection
# ---------------------------------------------------------------------------
def _vmem_budget():
    """Returns (vmem_limit_bytes for the compiler, tile-selection budget)."""
    try:
        cap = int(pltpu.get_tpu_info().vmem_capacity_bytes)
    except Exception:
        cap = 64 << 20  # conservative: v7x per-TensorCore VMEM
    vmem_limit = min(cap * 3 // 4, 100 << 20)
    vmem_limit = max(vmem_limit, 32 << 20)
    budget = int(vmem_limit * 0.85)       # headroom for Mosaic scratch
    return vmem_limit, budget


def _choose_tiles(n, c_pad, out_pad, x_bytes, out_bytes, budget):
    """Largest row tile that fits the VMEM budget; split K only if needed."""
    n16 = _round_up(max(n, 1), 16)        # bf16 packs [16,128] per vreg
    m = c_pad // 128
    k_cands = sorted({128 * d for d in range(1, m + 1) if m % d == 0},
                     reverse=True)

    def vmem_use(tn, tk, kt):
        w_bufs = 1 if kt == 1 else 2          # resident weight single-buffered
        return (2 * tn * tk * x_bytes          # x, double-buffered
                + w_bufs * tk * out_pad * 2    # bf16 fused weight
                + 2 * out_pad * 4              # bias
                + 2 * tn * out_pad * out_bytes # output, double-buffered
                + tn * out_pad * 4)            # f32 accumulator scratch

    for tk in k_cands:
        kt = c_pad // tk
        tn = min(512, n16)
        while tn > 16 and vmem_use(tn, tk, kt) > budget:
            tn = max(16, _round_up(tn // 2, 16))
        if vmem_use(tn, tk, kt) <= budget:
            return tn, tk
    return 16, 128


# ---------------------------------------------------------------------------
# Forward
# ---------------------------------------------------------------------------
def fpn_predictor_forward(x, w_fused_bf16, b_fused_f32, meta, *,
                          _tile_override=None):
    """x: (N, C) or (N, C, 1, 1). Params from prepare_fpn_predictor_params."""
    if x.ndim == 4:
        assert x.shape[2] == 1 and x.shape[3] == 1
        x = x.reshape(x.shape[0], -1)
    n, c = x.shape
    assert c == meta["c"], "feature width mismatch with prepared params"
    c_pad, out_pad = meta["c_pad"], meta["out_pad"]
    out_dtype = x.dtype

    # Zero-pad the feature dim only when C is not a 128-multiple (demo-sized
    # C); realistic FPN widths (1024/2048/...) hit the no-op path so x is
    # never copied before the pallas_call operand DMA.
    if c_pad != c:
        x = jnp.pad(x, ((0, 0), (0, c_pad - c)))

    x_bytes = x.dtype.itemsize
    out_bytes = jnp.dtype(out_dtype).itemsize
    vmem_limit, budget = _vmem_budget()

    if _tile_override is not None:
        tile_n, tile_k = _tile_override
        assert c_pad % tile_k == 0 and tile_n % 16 == 0
    else:
        tile_n, tile_k = _choose_tiles(n, c_pad, out_pad, x_bytes, out_bytes,
                                       budget)
    k_tiles = c_pad // tile_k
    grid = (pl.cdiv(n, tile_n), k_tiles)   # no N padding: masked last block

    cost = pl.CostEstimate(
        flops=int(2 * n * c_pad * out_pad),
        transcendentals=0,
        bytes_accessed=int(n * c_pad * x_bytes + c_pad * out_pad * 2
                           + out_pad * 4 + n * out_pad * out_bytes),
    )

    def call(use_single_buffer):
        if use_single_buffer:
            b_spec = pl.BlockSpec((1, out_pad), lambda i, k: (0, 0),
                                  pipeline_mode=pl.Buffered(1))
            if k_tiles == 1:
                w_spec = pl.BlockSpec((tile_k, out_pad), lambda i, k: (k, 0),
                                      pipeline_mode=pl.Buffered(1))
            else:
                w_spec = pl.BlockSpec((tile_k, out_pad), lambda i, k: (k, 0))
        else:
            b_spec = pl.BlockSpec((1, out_pad), lambda i, k: (0, 0))
            w_spec = pl.BlockSpec((tile_k, out_pad), lambda i, k: (k, 0))

        return pl.pallas_call(
            _fpn_predictor_kernel,
            out_shape=jax.ShapeDtypeStruct((n, out_pad), out_dtype),
            grid_spec=pltpu.PrefetchScalarGridSpec(
                num_scalar_prefetch=0,
                grid=grid,
                in_specs=[
                    pl.BlockSpec((tile_n, tile_k), lambda i, k: (i, k)),  # x
                    w_spec,                                               # W
                    b_spec,                                               # b
                ],
                out_specs=pl.BlockSpec((tile_n, out_pad),
                                       lambda i, k: (i, 0)),
                scratch_shapes=[pltpu.VMEM((tile_n, out_pad), jnp.float32)],
            ),
            compiler_params=pltpu.CompilerParams(
                dimension_semantics=("parallel", "arbitrary"),
                vmem_limit_bytes=vmem_limit,
            ),
            cost_estimate=cost,
        )(x, w_fused_bf16, b_fused_f32)

    try:
        fused = call(True)
    except Exception:
        # TODO(synk): drop this fallback once pl.Buffered(1) single-buffering
        # of the resident weight/bias blocks is confirmed on the target build.
        fused = call(False)

    scores = fused[:, :meta["num_classes"]]
    bbox_deltas = fused[:, meta["num_classes"]:meta["out_total"]]
    return scores, bbox_deltas


# ---------------------------------------------------------------------------
# Synthetic init mirroring the PyTorch module, and references
# ---------------------------------------------------------------------------
def init_fpn_predictor_params(key, in_channels, num_classes,
                              cls_agnostic_bbox_reg=False, dtype=jnp.float32):
    """Weights in (in, out) layout (transpose of PyTorch's (out, in))."""
    num_bbox_reg_classes = 2 if cls_agnostic_bbox_reg else num_classes
    k_cls, k_bbox = jax.random.split(key)
    w_cls = (0.01 * jax.random.normal(
        k_cls, (in_channels, num_classes))).astype(dtype)
    b_cls = jnp.zeros((1, num_classes), dtype=dtype)
    w_bbox = (0.001 * jax.random.normal(
        k_bbox, (in_channels, num_bbox_reg_classes * 4))).astype(dtype)
    b_bbox = jnp.zeros((1, num_bbox_reg_classes * 4), dtype=dtype)
    return w_cls, b_cls, w_bbox, b_bbox


def _reference_bf16(x2d, w_cls, b_cls, w_bbox, b_bbox):
    # Reference with the same bf16 operand quantization + f32 accumulation
    # as the kernel (documented bf16 contract).
    xq = x2d.astype(jnp.bfloat16).astype(jnp.float32)
    wc = w_cls.astype(jnp.bfloat16).astype(jnp.float32)
    wb = w_bbox.astype(jnp.bfloat16).astype(jnp.float32)
    return (xq @ wc + b_cls.astype(jnp.float32),
            xq @ wb + b_bbox.astype(jnp.float32))


if __name__ == "__main__":
    key = jax.random.PRNGKey(0)
    k_x, k_p, k_x2 = jax.random.split(key, 3)

    # --- Test 1: module-style shapes: pooled (N, C, 1, 1) features ---------
    N, in_channels, num_classes = 8, 32, 51
    x = jax.random.normal(k_x, (N, in_channels, 1, 1), dtype=jnp.float32)
    w_cls, b_cls, w_bbox, b_bbox = init_fpn_predictor_params(
        k_p, in_channels, num_classes, cls_agnostic_bbox_reg=False)
    params = prepare_fpn_predictor_params(w_cls, b_cls, w_bbox, b_bbox)

    scores, bbox_deltas = fpn_predictor_forward(x, *params)
    jax.block_until_ready((scores, bbox_deltas))

    x2d = x.reshape(N, -1)
    ref_s, ref_b = _reference_bf16(x2d, w_cls, b_cls, w_bbox, b_bbox)
    assert scores.shape == (N, num_classes)
    assert bbox_deltas.shape == (N, num_classes * 4)
    assert jnp.allclose(scores, ref_s, atol=1e-4, rtol=1e-4)
    assert jnp.allclose(bbox_deltas, ref_b, atol=1e-4, rtol=1e-4)
    # Loose check against the full-f32 reference (bf16 quantization error).
    assert jnp.allclose(scores, x2d @ w_cls + b_cls, atol=5e-3, rtol=5e-2)
    assert jnp.allclose(bbox_deltas, x2d @ w_bbox + b_bbox, atol=5e-3, rtol=5e-2)

    # --- Test 2: N not a tile multiple, C already lane-aligned (no pads) ---
    N2, C2 = 600, 256
    x2 = jax.random.normal(k_x2, (N2, C2), dtype=jnp.float32)
    raw2 = init_fpn_predictor_params(jax.random.PRNGKey(1), C2, num_classes)
    params2 = prepare_fpn_predictor_params(*raw2)
    s2, d2 = fpn_predictor_forward(x2, *params2)
    jax.block_until_ready((s2, d2))
    r2s, r2b = _reference_bf16(x2, *raw2)
    assert s2.shape == (N2, num_classes) and d2.shape == (N2, num_classes * 4)
    assert jnp.allclose(s2, r2s, atol=1e-4, rtol=1e-4)
    assert jnp.allclose(d2, r2b, atol=1e-4, rtol=1e-4)

    # --- Test 3: force a split-K grid to exercise the accumulator path -----
    s3, d3 = fpn_predictor_forward(x2, *params2, _tile_override=(128, 128))
    jax.block_until_ready((s3, d3))
    assert jnp.allclose(s3, r2s, atol=1e-4, rtol=1e-4)
    assert jnp.allclose(d3, r2b, atol=1e-4, rtol=1e-4)

    print("KERNEL_OK")
</pallas_src>

<mosaic_0001>
module attributes {stable_mosaic.version = 11 : i64} {
  func.func @_fpn_predictor_kernel(%arg0: i32, %arg1: i32, %arg2: memref<16x128xf32, #tpu.memory_space<vmem>>, %arg3: memref<128x256xbf16, #tpu.memory_space<vmem>>, %arg4: memref<1x256xf32, #tpu.memory_space<vmem>>, %arg5: memref<16x256xf32, #tpu.memory_space<vmem>>, %arg6: memref<16x256xf32, #tpu.memory_space<vmem>>) attributes {dimension_semantics = [#tpu.dimension_semantics<parallel>, #tpu.dimension_semantics<arbitrary>], iteration_bounds = array<i64: 1, 1>, scalar_prefetch = 0 : i64, scratch_operands = 1 : i64, tpu.core_type = #tpu.core_type<tc>, window_params = [{transform_indices = @transform_0, window_bounds = array<i64: 16, 128>}, {pipeline_mode = #tpu.pipeline_mode<synchronous>, transform_indices = @transform_1, window_bounds = array<i64: 128, 256>}, {pipeline_mode = #tpu.pipeline_mode<synchronous>, transform_indices = @transform_2, window_bounds = array<i64: 1, 256>}, {transform_indices = @transform_3, window_bounds = array<i64: 16, 256>}]} {
    %c0_i32 = arith.constant 0 : i32
    %0 = arith.cmpi eq, %arg1, %c0_i32 : i32
    %1 = arith.extui %0 : i1 to i32
    %c0_i32_0 = arith.constant 0 : i32
    %2 = arith.cmpi ne, %1, %c0_i32_0 : i32
    scf.if %2 {
      %cst_10 = arith.constant 0.000000e+00 : f32
      %13 = vector.broadcast %cst_10 : f32 to vector<16x256xf32>
      %c0_11 = arith.constant 0 : index
      %c0_12 = arith.constant 0 : index
      %14 = vector.load %arg6[%c0_11, %c0_12] : memref<16x256xf32, #tpu.memory_space<vmem>>, vector<16x256xf32>
      tpu.vector_store %arg6[%c0_11, %c0_12], %13 {strides = array<i32>} : memref<16x256xf32, #tpu.memory_space<vmem>>, vector<16x256xf32>,
    } else {
    }
    %c0 = arith.constant 0 : index
    %c0_1 = arith.constant 0 : index
    %3 = vector.load %arg2[%c0, %c0_1] : memref<16x128xf32, #tpu.memory_space<vmem>>, vector<16x128xf32>
    %4 = arith.truncf %3 : vector<16x128xf32> to vector<16x128xbf16>
    %c0_2 = arith.constant 0 : index
    %c0_3 = arith.constant 0 : index
    %5 = vector.load %arg6[%c0_2, %c0_3] : memref<16x256xf32, #tpu.memory_space<vmem>>, vector<16x256xf32>
    %c0_4 = arith.constant 0 : index
    %c0_5 = arith.constant 0 : index
    %6 = vector.load %arg3[%c0_4, %c0_5] : memref<128x256xbf16, #tpu.memory_space<vmem>>, vector<128x256xbf16>
    %cst = arith.constant dense<0.000000e+00> : vector<16x256xf32>
    %7 = tpu.matmul %4, %6, %cst {dimension_numbers = #tpu.dot_dimension_numbers<[1], [0], [0], [1], [0, 0, 1, 1], [], []>} : vector<16x128xbf16>, vector<128x256xbf16>, vector<16x256xf32> -> vector<16x256xf32>
    %8 = arith.addf %5, %7 : vector<16x256xf32>
    %c0_6 = arith.constant 0 : index
    %c0_7 = arith.constant 0 : index
    %9 = vector.load %arg6[%c0_6, %c0_7] : memref<16x256xf32, #tpu.memory_space<vmem>>, vector<16x256xf32>
    tpu.vector_store %arg6[%c0_6, %c0_7], %8 {strides = array<i32>} : memref<16x256xf32, #tpu.memory_space<vmem>>, vector<16x256xf32>,
    %c0_i32_8 = arith.constant 0 : i32
    %10 = arith.cmpi eq, %arg1, %c0_i32_8 : i32
    %11 = arith.extui %10 : i1 to i32
    %c0_i32_9 = arith.constant 0 : i32
    %12 = arith.cmpi ne, %11, %c0_i32_9 : i32
    scf.if %12 {
      %c0_10 = arith.constant 0 : index
      %c0_11 = arith.constant 0 : index
      %13 = vector.load %arg6[%c0_10, %c0_11] : memref<16x256xf32, #tpu.memory_space<vmem>>, vector<16x256xf32>
      %c0_12 = arith.constant 0 : index
      %c0_13 = arith.constant 0 : index
      %14 = vector.load %arg4[%c0_12, %c0_13] : memref<1x256xf32, #tpu.memory_space<vmem>>, vector<1x256xf32>
      %15 = vector.broadcast %14 : vector<1x256xf32> to vector<16x256xf32>
      %16 = arith.addf %13, %15 : vector<16x256xf32>
      %c0_14 = arith.constant 0 : index
      %c0_15 = arith.constant 0 : index
      %17 = vector.load %arg5[%c0_14, %c0_15] : memref<16x256xf32, #tpu.memory_space<vmem>>, vector<16x256xf32>
      tpu.vector_store %arg5[%c0_14, %c0_15], %16 {strides = array<i32>} : memref<16x256xf32, #tpu.memory_space<vmem>>, vector<16x256xf32>,
    } else {
    }
    return
  }
  func.func @transform_0(%arg0: i32, %arg1: i32) -> (i32, i32) {
    %c0_i32 = arith.constant 0 : i32
    return %arg0, %arg1 : i32, i32
  }
  func.func @transform_1(%arg0: i32, %arg1: i32) -> (i32, i32) {
    %c0_i32 = arith.constant 0 : i32
    %c0_i32_0 = arith.constant 0 : i32
    return %arg1, %c0_i32 : i32, i32
  }
  func.func @transform_2(%arg0: i32, %arg1: i32) -> (i32, i32) {
    %c0_i32 = arith.constant 0 : i32
    %c0_i32_0 = arith.constant 0 : i32
    %c0_i32_1 = arith.constant 0 : i32
    return %c0_i32, %c0_i32_0 : i32, i32
  }
  func.func @transform_3(%arg0: i32, %arg1: i32) -> (i32, i32) {
    %c0_i32 = arith.constant 0 : i32
    %c0_i32_0 = arith.constant 0 : i32
    return %arg0, %c0_i32 : i32, i32
  }
}

module attributes {stable_mosaic.version = 11 : i64} {
  func.func @_fpn_predictor_kernel(%arg0: i32, %arg1: i32, %arg2: memref<16x128xf32, #tpu.memory_space<vmem>>, %arg3: memref<128x256xbf16, #tpu.memory_space<vmem>>, %arg4: memref<1x256xf32, #tpu.memory_space<vmem>>, %arg5: memref<16x256xf32, #tpu.memory_space<vmem>>, %arg6: memref<16x256xf32, #tpu.memory_space<vmem>>) attributes {dimension_semantics = [#tpu.dimension_semantics<parallel>, #tpu.dimension_semantics<arbitrary>], iteration_bounds = array<i64: 1, 1>, scalar_prefetch = 0 : i64, scratch_operands = 1 : i64, tpu.core_type = #tpu.core_type<tc>, window_params = [{transform_indices = @transform_0, window_bounds = array<i64: 16, 128>}, {transform_indices = @transform_1, window_bounds = array<i64: 128, 256>}, {pipeline_mode = #tpu.pipeline_mode<synchronous>, transform_indices = @transform_2, window_bounds = array<i64: 1, 256>}, {transform_indices = @transform_3, window_bounds = array<i64: 16, 256>}]} {
    %c0_i32 = arith.constant 0 : i32
    %0 = arith.cmpi eq, %arg1, %c0_i32 : i32
    %1 = arith.extui %0 : i1 to i32
    %c0_i32_0 = arith.constant 0 : i32
    %2 = arith.cmpi ne, %1, %c0_i32_0 : i32
    scf.if %2 {
      %cst_10 = arith.constant 0.000000e+00 : f32
      %13 = vector.broadcast %cst_10 : f32 to vector<16x256xf32>
      %c0_11 = arith.constant 0 : index
      %c0_12 = arith.constant 0 : index
      %14 = vector.load %arg6[%c0_11, %c0_12] : memref<16x256xf32, #tpu.memory_space<vmem>>, vector<16x256xf32>
      tpu.vector_store %arg6[%c0_11, %c0_12], %13 {strides = array<i32>} : memref<16x256xf32, #tpu.memory_space<vmem>>, vector<16x256xf32>,
    } else {
    }
    %c0 = arith.constant 0 : index
    %c0_1 = arith.constant 0 : index
    %3 = vector.load %arg2[%c0, %c0_1] : memref<16x128xf32, #tpu.memory_space<vmem>>, vector<16x128xf32>
    %4 = arith.truncf %3 : vector<16x128xf32> to vector<16x128xbf16>
    %c0_2 = arith.constant 0 : index
    %c0_3 = arith.constant 0 : index
    %5 = vector.load %arg6[%c0_2, %c0_3] : memref<16x256xf32, #tpu.memory_space<vmem>>, vector<16x256xf32>
    %c0_4 = arith.constant 0 : index
    %c0_5 = arith.constant 0 : index
    %6 = vector.load %arg3[%c0_4, %c0_5] : memref<128x256xbf16, #tpu.memory_space<vmem>>, vector<128x256xbf16>
    %cst = arith.constant dense<0.000000e+00> : vector<16x256xf32>
    %7 = tpu.matmul %4, %6, %cst {dimension_numbers = #tpu.dot_dimension_numbers<[1], [0], [0], [1], [0, 0, 1, 1], [], []>} : vector<16x128xbf16>, vector<128x256xbf16>, vector<16x256xf32> -> vector<16x256xf32>
    %8 = arith.addf %5, %7 : vector<16x256xf32>
    %c0_6 = arith.constant 0 : index
    %c0_7 = arith.constant 0 : index
    %9 = vector.load %arg6[%c0_6, %c0_7] : memref<16x256xf32, #tpu.memory_space<vmem>>, vector<16x256xf32>
    tpu.vector_store %arg6[%c0_6, %c0_7], %8 {strides = array<i32>} : memref<16x256xf32, #tpu.memory_space<vmem>>, vector<16x256xf32>,
    %c0_i32_8 = arith.constant 0 : i32
    %10 = arith.cmpi eq, %arg1, %c0_i32_8 : i32
    %11 = arith.extui %10 : i1 to i32
    %c0_i32_9 = arith.constant 0 : i32
    %12 = arith.cmpi ne, %11, %c0_i32_9 : i32
    scf.if %12 {
      %c0_10 = arith.constant 0 : index
      %c0_11 = arith.constant 0 : index
      %13 = vector.load %arg6[%c0_10, %c0_11] : memref<16x256xf32, #tpu.memory_space<vmem>>, vector<16x256xf32>
      %c0_12 = arith.constant 0 : index
      %c0_13 = arith.constant 0 : index
      %14 = vector.load %arg4[%c0_12, %c0_13] : memref<1x256xf32, #tpu.memory_space<vmem>>, vector<1x256xf32>
      %15 = vector.broadcast %14 : vector<1x256xf32> to vector<16x256xf32>
      %16 = arith.addf %13, %15 : vector<16x256xf32>
      %c0_14 = arith.constant 0 : index
      %c0_15 = arith.constant 0 : index
      %17 = vector.load %arg5[%c0_14, %c0_15] : memref<16x256xf32, #tpu.memory_space<vmem>>, vector<16x256xf32>
      tpu.vector_store %arg5[%c0_14, %c0_15], %16 {strides = array<i32>} : memref<16x256xf32, #tpu.memory_space<vmem>>, vector<16x256xf32>,
    } else {
    }
    return
  }
  func.func @transform_0(%arg0: i32, %arg1: i32) -> (i32, i32) {
    %c0_i32 = arith.constant 0 : i32
    return %arg0, %arg1 : i32, i32
  }
  func.func @transform_1(%arg0: i32, %arg1: i32) -> (i32, i32) {
    %c0_i32 = arith.constant 0 : i32
    %c0_i32_0 = arith.constant 0 : i32
    return %arg1, %c0_i32 : i32, i32
  }
  func.func @transform_2(%arg0: i32, %arg1: i32) -> (i32, i32) {
    %c0_i32 = arith.constant 0 : i32
    %c0_i32_0 = arith.constant 0 : i32
    %c0_i32_1 = arith.constant 0 : i32
    return %c0_i32, %c0_i32_0 : i32, i32
  }
  func.func @transform_3(%arg0: i32, %arg1: i32) -> (i32, i32) {
    %c0_i32 = arith.constant 0 : i32
    %c0_i32_0 = arith.constant 0 : i32
    return %arg0, %c0_i32 : i32, i32
  }
}

</mosaic_0001>

<bundles_post_ra>
// kernel: tpu_custom_call.1
= control target key start
LH: loop header
LB: loop body
LE: loop exit
PB: predicated region body
PF: predicated region fallthrough
CT: control target
= control target key end

     0   :  { %8 = vsyncpa [#allocation4], 0  ;;  %s438_s0 = inlined_call_operand.hbm [shape: f32[8,128], index: 0, kind: input, shape index: {}]   ;;  %s439_s1 = inlined_call_operand.hbm [shape: bf16[128,256], index: 1, kind: input, shape index: {}]   ;;  %s440_s2 = inlined_call_operand.vmem [shape: f32[1,256], index: 2, kind: input, shape index: {}]   ;;  %s441_s3 = inlined_call_operand.hbm [shape: f32[8,256], index: 3, kind: output, shape index: {}]  }
   0x1   :  { %9 = vsyncpa [#allocation7], 0 }
   0x2   :  { %10 = vsyncpa [#allocation5], 0 }
   0x3   :  { %15 = vsyncadd [#allocation4], 128  ;;  %s371_s12 = smov [#allocation3]   ;;  %s299_s16 = scalar_lea.hbm %s438_s0, 128 }
   0x4   :  { %s16_s13 = sshll.u32 %s371_s12, 4  ;;  %p300_p0 = scmp.ne.s32.totalorder %s438_s0, %s299_s16  ;;  %s17_s13 = int_to_ptr.vmem [resolvable:$true] %s16_s13 }
   0x5   :  { %p303_p1 = scmp.lt.u32.totalorder %s299_s16, %s438_s0 }
   0x7   :  { %p305_p2 = pnand %p303_p1, %p300_p0 }
   0x9   :  { %308 = shalt.err (!%p305_p2)
}
   0xa   :  { %s309_s21 = scalar_lea.vmem %s17_s13, 128  ;;  %s313_s22 = scalar_lea.vmem %s17_s13, 256 }
   0xb   :  { %p310_p3 = scmp.ne.s32.totalorder %s17_s13, %s309_s21  ;;  %p314_p4 = scmp.lt.s32.totalorder %s17_s13, %s17_s13 }
   0xc   :  { %p315_p5 = scmp.lt.s32.totalorder %s313_s22, %s309_s21 }
   0xe   :  { %p316_p6 = por %p315_p5, %p314_p4 }
  0x10   :  { %p317_p7 = pnand %p316_p6, %p310_p3 }
  0x12   :  { %320 = shalt.err (!%p317_p7)
}
  0x13   :  { %s372_s23 = smov 128   ;;  %s373_s24 = smov 8  }
  0x14   :  { %22 = dma.hbm_to_vmem [thread:$0]  %s438_s0, 128, %s17_s13, [#allocation4], %s372_s23, %s372_s23, %s373_s24  }
  0x15   :  { %s374_s27 = smov [#allocation6]   ;;  %s321_s4 = scalar_lea.hbm %s439_s1, 2048 }
  0x16   :  { %s28_s28 = sshll.u32 %s374_s27, 4  ;;  %p322_p8 = scmp.ne.s32.totalorder %s439_s1, %s321_s4  ;;  %s29_s28 = int_to_ptr.vmem [resolvable:$true] %s28_s28 }
  0x17   :  { %p325_p9 = scmp.lt.u32.totalorder %s321_s4, %s439_s1 }
  0x19   :  { %p327_p10 = pnand %p325_p9, %p322_p8 }
  0x1b   :  { %330 = shalt.err (!%p327_p10)
}
  0x1c   :  { %s331_s9 = scalar_lea.vmem %s29_s28, 2048  ;;  %p336_p12 = scmp.lt.s32.totalorder %s29_s28, %s29_s28 }
  0x1d   :  { %p332_p11 = scmp.ne.s32.totalorder %s29_s28, %s331_s9  ;;  %p337_p13 = scmp.lt.s32.totalorder %s331_s9, %s331_s9 }
  0x1f   :  { %p338_p0 = por %p337_p13, %p336_p12 }
  0x21   :  { %p339_p1 = pnand %p338_p0, %p332_p11 }
  0x23   :  { %342 = shalt.err (!%p339_p1)
}
  0x24   :  { %34 = dma.hbm_to_vmem [thread:$0]  %s439_s1, 2048, %s29_s28, [#allocation7], %s372_s23, %s372_s23, %s373_s24  }
  0x25   :  { %365 = dma.done.wait [#allocation4], 256  }
  0x26   :  { %366 = vsyncadd [#allocation4], 4294967040 }
  0x27   :  { %367 = dma.done.wait [#allocation7], 2048  }
  0x28   :  { %368 = vsyncadd [#allocation7], 4294965248  ;;  %v375_v0 = vmov 0   ;;  %v275_v1 = vld [vmem:[#allocation6 + $0x4] ss:$8 sps:$4 sm:$0xff]   ;;  %v52_v17 = vld [vmem:[#allocation3] sm:$0xff]  ;;  %v215_v20 = vlaneseq }
  0x29   :  { %187 = vmatprep.mubr.bf16.mxu0 %v375_v0  ;;  %v277_v2 = vld [vmem:[#allocation6] ss:$8 sps:$4 sm:$0xff]   ;;  %155 = vmatprep.subr.bf16.mxu0 %v275_v1  ;;  %v278_v3 = vld [vmem:[#allocation6 + $0x14] ss:$8 sps:$4 sm:$0xff]   ;;  %v280_v4 = vld [vmem:[#allocation6 + $0x10] ss:$8 sps:$4 sm:$0xff]  }
  0x2a   :  { %156 = vmatpush1.bf16.msra.mxu0 %v277_v2  ;;  %v281_v5 = vld [vmem:[#allocation6 + $0x24] ss:$8 sps:$4 sm:$0xff]   ;;  %v283_v6 = vld [vmem:[#allocation6 + $0x20] ss:$8 sps:$4 sm:$0xff]   ;;  %v284_v7 = vld [vmem:[#allocation6 + $0x34] ss:$8 sps:$4 sm:$0xff]  }
  0x2b   :  { %157 = vmatprep.subr.bf16.mxu0 %v278_v3  ;;  %v286_v8 = vld [vmem:[#allocation6 + $0x30] ss:$8 sps:$4 sm:$0xff]   ;;  %v287_v9 = vld [vmem:[#allocation6 + $0x44] ss:$8 sps:$4 sm:$0xff]   ;;  %v289_v10 = vld [vmem:[#allocation6 + $0x40] ss:$8 sps:$4 sm:$0xff]  }
  0x2c   :  { %v290_v11 = vld [vmem:[#allocation6 + $0x54] ss:$8 sps:$4 sm:$0xff]   ;;  %v292_v12 = vld [vmem:[#allocation6 + $0x50] ss:$8 sps:$4 sm:$0xff]   ;;  %v293_v13 = vld [vmem:[#allocation6 + $0x64] ss:$8 sps:$4 sm:$0xff]  }
  0x2d   :  { %v295_v14 = vld [vmem:[#allocation6 + $0x60] ss:$8 sps:$4 sm:$0xff]   ;;  %v296_v15 = vld [vmem:[#allocation6 + $0x74] ss:$8 sps:$4 sm:$0xff]   ;;  %v298_v16 = vld [vmem:[#allocation6 + $0x70] ss:$8 sps:$4 sm:$0xff]  }
  0x2e   :  { %158 = vmatpush1.bf16.msra.mxu0 %v280_v4  ;;  %v53_v18 = vld [vmem:[#allocation3 + $0x8] sm:$0xff]  ;;  %v216_v21 = vshrl.u32 %v215_v20, 7  ;;  %v213_v23 = vld [vmem:[%s440_s2] sm:$0x3] }
  0x2f   :  { %159 = vmatprep.subr.bf16.mxu0 %v281_v5  ;;  %v54_v19 = vpack.c.bf16 %v53_v18, %v52_v17 }
  0x30   :  { %v217_v22 = vsub.s32 0, %v216_v21  ;;  %v221_v24 = vsub.s32 1, %v216_v21 }
  0x32   :  { %160 = vmatpush1.bf16.msra.mxu0 %v283_v6  ;;  %v218_v25 = vrot.slane %v213_v23, %v217_v22  ;;  %v222_v26 = vrot.slane %v213_v23, %v221_v24 }
  0x33   :  { %161 = vmatprep.subr.bf16.mxu0 %v284_v7 }
  0x36   :  { %162 = vmatpush1.bf16.msra.mxu0 %v286_v8 }
  0x37   :  { %163 = vmatprep.subr.bf16.mxu0 %v287_v9 }
  0x3a   :  { %164 = vmatpush1.bf16.msra.mxu0 %v289_v10 }
  0x3b   :  { %165 = vmatprep.subr.bf16.mxu0 %v290_v11 }
  0x3e   :  { %166 = vmatpush1.bf16.msra.mxu0 %v292_v12 }
  0x3f   :  { %167 = vmatprep.subr.bf16.mxu0 %v293_v13 }
  0x42   :  { %168 = vmatpush1.bf16.msra.mxu0 %v295_v14 }
  0x43   :  { %169 = vmatprep.subr.bf16.mxu0 %v296_v15 }
  0x46   :  { %170 = vmatpush1.bf16.msra.mxu0 %v298_v16 }
  0x49   :  { %188 = vmatmul.mubr.bf16.vlgmr.msra.gmra.mrb[0].mxu0 %v54_v19 }
 0x11c   :  { %v189_v27 = vpop.f32.mrb[0].mxu0 }
 0x11d   :  { %v225_v28 = vadd.f32 %v218_v25, %v189_v27  ;;  %v191_v29 = vpop.f32.mrb[1].mxu0 }
 0x11e   :  { %v226_v30 = vadd.f32 %v222_v26, %v191_v29  ;;  %v193_v31 = vpop.f32.mrb[2].mxu0 }
 0x11f   :  { %229 = vst [vmem:[#allocation8] sm:$0xff] %v225_v28  ;;  %v227_v32 = vadd.f32 %v218_v25, %v193_v31  ;;  %v195_v33 = vpop.f32.mrb[3].mxu0 }
 0x120   :  { %230 = vst [vmem:[#allocation8 + $0x8] sm:$0xff] %v226_v30  ;;  %v228_v34 = vadd.f32 %v222_v26, %v195_v33 }
 0x121   :  { %231 = vst [vmem:[#allocation8 + $0x10] sm:$0xff] %v227_v32 }
 0x122   :  { %232 = vst [vmem:[#allocation8 + $0x18] sm:$0xff] %v228_v34 }
 0x123   :  { %237 = vsyncadd [#allocation5], 256  ;;  %s376_s12 = smov [#allocation8]  }
 0x124   :  { %s238_s13 = sshll.u32 %s376_s12, 4  ;;  %s239_s13 = int_to_ptr.vmem [resolvable:$true] %s238_s13 }
 0x125   :  { %s343_s2 = scalar_lea.vmem %s239_s13, 256  ;;  %s347_s14 = scalar_lea.vmem %s239_s13, 512 }
 0x126   :  { %p344_p2 = scmp.ne.s32.totalorder %s239_s13, %s343_s2  ;;  %p348_p3 = scmp.lt.s32.totalorder %s239_s13, %s239_s13 }
 0x127   :  { %p349_p4 = scmp.lt.s32.totalorder %s347_s14, %s343_s2 }
 0x129   :  { %p350_p5 = por %p349_p4, %p348_p3 }
 0x12b   :  { %p351_p6 = pnand %p350_p5, %p344_p2 }
 0x12d   :  { %354 = shalt.err (!%p351_p6)
}
 0x12e   :  { %s355_s17 = scalar_lea.hbm %s441_s3, 256 }
 0x12f   :  { %p356_p7 = scmp.ne.s32.totalorder %s441_s3, %s355_s17  ;;  %p359_p8 = scmp.lt.u32.totalorder %s355_s17, %s441_s3 }
 0x131   :  { %p361_p9 = pnand %p359_p8, %p356_p7 }
 0x133   :  { %364 = shalt.err (!%p361_p9)
}
 0x134   :  { %s377_s22 = smov 256   ;;  %s378_s23 = smov 16  }
 0x135   :  { %244 = dma.vmem_to_hbm [thread:$0]  %s239_s13, 256, %s441_s3, [#allocation5], %s377_s22, %s377_s22, %s378_s23  }
 0x136   :  { %369 = dma.done.wait [#allocation5], 512  }
 0x137   :  { %370 = vsyncadd [#allocation5], 4294966784 }
 0x138   :  { %248 = vsyncpa [#allocation4], 1 }
 0x139   :  { %249 = vsyncpa [#allocation7], 1 }
 0x13a   :  { %250 = vsyncpa [#allocation5], 1 }

// kernel: tpu_custom_call.1
= control target key start
LH: loop header
LB: loop body
LE: loop exit
PB: predicated region body
PF: predicated region fallthrough
CT: control target
= control target key end

     0   :  { %8 = vsyncpa [#allocation4], 0  ;;  %s438_s0 = inlined_call_operand.hbm [shape: f32[8,128], index: 0, kind: input, shape index: {}]   ;;  %s439_s1 = inlined_call_operand.hbm [shape: bf16[128,256], index: 1, kind: input, shape index: {}]   ;;  %s440_s2 = inlined_call_operand.vmem [shape: f32[1,256], index: 2, kind: input, shape index: {}]   ;;  %s441_s3 = inlined_call_operand.hbm [shape: f32[8,256], index: 3, kind: output, shape index: {}]  }
   0x1   :  { %9 = vsyncpa [#allocation7], 0 }
   0x2   :  { %10 = vsyncpa [#allocation5], 0 }
   0x3   :  { %15 = vsyncadd [#allocation4], 128  ;;  %s371_s12 = smov [#allocation3]   ;;  %s299_s16 = scalar_lea.hbm %s438_s0, 128 }
   0x4   :  { %s16_s13 = sshll.u32 %s371_s12, 4  ;;  %p300_p0 = scmp.ne.s32.totalorder %s438_s0, %s299_s16  ;;  %s17_s13 = int_to_ptr.vmem [resolvable:$true] %s16_s13 }
   0x5   :  { %p303_p1 = scmp.lt.u32.totalorder %s299_s16, %s438_s0 }
   0x7   :  { %p305_p2 = pnand %p303_p1, %p300_p0 }
   0x9   :  { %308 = shalt.err (!%p305_p2)
}
   0xa   :  { %s309_s21 = scalar_lea.vmem %s17_s13, 128  ;;  %s313_s22 = scalar_lea.vmem %s17_s13, 256 }
   0xb   :  { %p310_p3 = scmp.ne.s32.totalorder %s17_s13, %s309_s21  ;;  %p314_p4 = scmp.lt.s32.totalorder %s17_s13, %s17_s13 }
   0xc   :  { %p315_p5 = scmp.lt.s32.totalorder %s313_s22, %s309_s21 }
   0xe   :  { %p316_p6 = por %p315_p5, %p314_p4 }
  0x10   :  { %p317_p7 = pnand %p316_p6, %p310_p3 }
  0x12   :  { %320 = shalt.err (!%p317_p7)
}
  0x13   :  { %s372_s23 = smov 128   ;;  %s373_s24 = smov 8  }
  0x14   :  { %22 = dma.hbm_to_vmem [thread:$0]  %s438_s0, 128, %s17_s13, [#allocation4], %s372_s23, %s372_s23, %s373_s24  }
  0x15   :  { %s374_s27 = smov [#allocation6]   ;;  %s321_s4 = scalar_lea.hbm %s439_s1, 2048 }
  0x16   :  { %s28_s28 = sshll.u32 %s374_s27, 4  ;;  %p322_p8 = scmp.ne.s32.totalorder %s439_s1, %s321_s4  ;;  %s29_s28 = int_to_ptr.vmem [resolvable:$true] %s28_s28 }
  0x17   :  { %p325_p9 = scmp.lt.u32.totalorder %s321_s4, %s439_s1 }
  0x19   :  { %p327_p10 = pnand %p325_p9, %p322_p8 }
  0x1b   :  { %330 = shalt.err (!%p327_p10)
}
  0x1c   :  { %s331_s9 = scalar_lea.vmem %s29_s28, 2048  ;;  %p336_p12 = scmp.lt.s32.totalorder %s29_s28, %s29_s28 }
  0x1d   :  { %p332_p11 = scmp.ne.s32.totalorder %s29_s28, %s331_s9  ;;  %p337_p13 = scmp.lt.s32.totalorder %s331_s9, %s331_s9 }
  0x1f   :  { %p338_p0 = por %p337_p13, %p336_p12 }
  0x21   :  { %p339_p1 = pnand %p338_p0, %p332_p11 }
  0x23   :  { %342 = shalt.err (!%p339_p1)
}
  0x24   :  { %34 = dma.hbm_to_vmem [thread:$0]  %s439_s1, 2048, %s29_s28, [#allocation7], %s372_s23, %s372_s23, %s373_s24  }
  0x25   :  { %365 = dma.done.wait [#allocation4], 256  }
  0x26   :  { %366 = vsyncadd [#allocation4], 4294967040 }
  0x27   :  { %367 = dma.done.wait [#allocation7], 2048  }
  0x28   :  { %368 = vsyncadd [#allocation7], 4294965248  ;;  %v375_v0 = vmov 0   ;;  %v275_v1 = vld [vmem:[#allocation6 + $0x4] ss:$8 sps:$4 sm:$0xff]   ;;  %v52_v17 = vld [vmem:[#allocation3] sm:$0xff]  ;;  %v215_v20 = vlaneseq }
  0x29   :  { %187 = vmatprep.mubr.bf16.mxu0 %v375_v0  ;;  %v277_v2 = vld [vmem:[#allocation6] ss:$8 sps:$4 sm:$0xff]   ;;  %155 = vmatprep.subr.bf16.mxu0 %v275_v1  ;;  %v278_v3 = vld [vmem:[#allocation6 + $0x14] ss:$8 sps:$4 sm:$0xff]   ;;  %v280_v4 = vld [vmem:[#allocation6 + $0x10] ss:$8 sps:$4 sm:$0xff]  }
  0x2a   :  { %156 = vmatpush1.bf16.msra.mxu0 %v277_v2  ;;  %v281_v5 = vld [vmem:[#allocation6 + $0x24] ss:$8 sps:$4 sm:$0xff]   ;;  %v283_v6 = vld [vmem:[#allocation6 + $0x20] ss:$8 sps:$4 sm:$0xff]   ;;  %v284_v7 = vld [vmem:[#allocation6 + $0x34] ss:$8 sps:$4 sm:$0xff]  }
  0x2b   :  { %157 = vmatprep.subr.bf16.mxu0 %v278_v3  ;;  %v286_v8 = vld [vmem:[#allocation6 + $0x30] ss:$8 sps:$4 sm:$0xff]   ;;  %v287_v9 = vld [vmem:[#allocation6 + $0x44] ss:$8 sps:$4 sm:$0xff]   ;;  %v289_v10 = vld [vmem:[#allocation6 + $0x40] ss:$8 sps:$4 sm:$0xff]  }
  0x2c   :  { %v290_v11 = vld [vmem:[#allocation6 + $0x54] ss:$8 sps:$4 sm:$0xff]   ;;  %v292_v12 = vld [vmem:[#allocation6 + $0x50] ss:$8 sps:$4 sm:$0xff]   ;;  %v293_v13 = vld [vmem:[#allocation6 + $0x64] ss:$8 sps:$4 sm:$0xff]  }
  0x2d   :  { %v295_v14 = vld [vmem:[#allocation6 + $0x60] ss:$8 sps:$4 sm:$0xff]   ;;  %v296_v15 = vld [vmem:[#allocation6 + $0x74] ss:$8 sps:$4 sm:$0xff]   ;;  %v298_v16 = vld [vmem:[#allocation6 + $0x70] ss:$8 sps:$4 sm:$0xff]  }
  0x2e   :  { %158 = vmatpush1.bf16.msra.mxu0 %v280_v4  ;;  %v53_v18 = vld [vmem:[#allocation3 + $0x8] sm:$0xff]  ;;  %v216_v21 = vshrl.u32 %v215_v20, 7  ;;  %v213_v23 = vld [vmem:[%s440_s2] sm:$0x3] }
  0x2f   :  { %159 = vmatprep.subr.bf16.mxu0 %v281_v5  ;;  %v54_v19 = vpack.c.bf16 %v53_v18, %v52_v17 }
  0x30   :  { %v217_v22 = vsub.s32 0, %v216_v21  ;;  %v221_v24 = vsub.s32 1, %v216_v21 }
  0x32   :  { %160 = vmatpush1.bf16.msra.mxu0 %v283_v6  ;;  %v218_v25 = vrot.slane %v213_v23, %v217_v22  ;;  %v222_v26 = vrot.slane %v213_v23, %v221_v24 }
  0x33   :  { %161 = vmatprep.subr.bf16.mxu0 %v284_v7 }
  0x36   :  { %162 = vmatpush1.bf16.msra.mxu0 %v286_v8 }
  0x37   :  { %163 = vmatprep.subr.bf16.mxu0 %v287_v9 }
  0x3a   :  { %164 = vmatpush1.bf16.msra.mxu0 %v289_v10 }
  0x3b   :  { %165 = vmatprep.subr.bf16.mxu0 %v290_v11 }
  0x3e   :  { %166 = vmatpush1.bf16.msra.mxu0 %v292_v12 }
  0x3f   :  { %167 = vmatprep.subr.bf16.mxu0 %v293_v13 }
  0x42   :  { %168 = vmatpush1.bf16.msra.mxu0 %v295_v14 }
  0x43   :  { %169 = vmatprep.subr.bf16.mxu0 %v296_v15 }
  0x46   :  { %170 = vmatpush1.bf16.msra.mxu0 %v298_v16 }
  0x49   :  { %188 = vmatmul.mubr.bf16.vlgmr.msra.gmra.mrb[0].mxu0 %v54_v19 }
 0x11c   :  { %v189_v27 = vpop.f32.mrb[0].mxu0 }
 0x11d   :  { %v225_v28 = vadd.f32 %v218_v25, %v189_v27  ;;  %v191_v29 = vpop.f32.mrb[1].mxu0 }
 0x11e   :  { %v226_v30 = vadd.f32 %v222_v26, %v191_v29  ;;  %v193_v31 = vpop.f32.mrb[2].mxu0 }
 0x11f   :  { %229 = vst [vmem:[#allocation8] sm:$0xff] %v225_v28  ;;  %v227_v32 = vadd.f32 %v218_v25, %v193_v31  ;;  %v195_v33 = vpop.f32.mrb[3].mxu0 }
 0x120   :  { %230 = vst [vmem:[#allocation8 + $0x8] sm:$0xff] %v226_v30  ;;  %v228_v34 = vadd.f32 %v222_v26, %v195_v33 }
 0x121   :  { %231 = vst [vmem:[#allocation8 + $0x10] sm:$0xff] %v227_v32 }
 0x122   :  { %232 = vst [vmem:[#allocation8 + $0x18] sm:$0xff] %v228_v34 }
 0x123   :  { %237 = vsyncadd [#allocation5], 256  ;;  %s376_s12 = smov [#allocation8]  }
 0x124   :  { %s238_s13 = sshll.u32 %s376_s12, 4  ;;  %s239_s13 = int_to_ptr.vmem [resolvable:$true] %s238_s13 }
 0x125   :  { %s343_s2 = scalar_lea.vmem %s239_s13, 256  ;;  %s347_s14 = scalar_lea.vmem %s239_s13, 512 }
 0x126   :  { %p344_p2 = scmp.ne.s32.totalorder %s239_s13, %s343_s2  ;;  %p348_p3 = scmp.lt.s32.totalorder %s239_s13, %s239_s13 }
 0x127   :  { %p349_p4 = scmp.lt.s32.totalorder %s347_s14, %s343_s2 }
 0x129   :  { %p350_p5 = por %p349_p4, %p348_p3 }
 0x12b   :  { %p351_p6 = pnand %p350_p5, %p344_p2 }
 0x12d   :  { %354 = shalt.err (!%p351_p6)
}
 0x12e   :  { %s355_s17 = scalar_lea.hbm %s441_s3, 256 }
 0x12f   :  { %p356_p7 = scmp.ne.s32.totalorder %s441_s3, %s355_s17  ;;  %p359_p8 = scmp.lt.u32.totalorder %s355_s17, %s441_s3 }
 0x131   :  { %p361_p9 = pnand %p359_p8, %p356_p7 }
 0x133   :  { %364 = shalt.err (!%p361_p9)
}
 0x134   :  { %s377_s22 = smov 256   ;;  %s378_s23 = smov 16  }
 0x135   :  { %244 = dma.vmem_to_hbm [thread:$0]  %s239_s13, 256, %s441_s3, [#allocation5], %s377_s22, %s377_s22, %s378_s23  }
 0x136   :  { %369 = dma.done.wait [#allocation5], 512  }
 0x137   :  { %370 = vsyncadd [#allocation5], 4294966784 }
 0x138   :  { %248 = vsyncpa [#allocation4], 1 }
 0x139   :  { %249 = vsyncpa [#allocation7], 1 }
 0x13a   :  { %250 = vsyncpa [#allocation5], 1 }

</bundles_post_ra>
